<compile_context>
chip_gen: v6e
topology: v6e:2x2x1
jax: 0.10.0
libtpu: 0.0.40
codegen_flags: <defaults>
</compile_context>

<pallas_src>
import jax
import jax.numpy as jnp
from jax.experimental import pallas as pl
from jax.experimental.pallas import tpu as pltpu

EPS = 1e-5


# ----------------------------- kernels -------------------------------------
def _revin_norm_kernel(x_ref, w_ref, b_ref, y_ref, mean_ref, stdev_ref):
    # x_ref: (Bb, T, TC) block; w_ref/b_ref: (1, 1, TC).
    xs = x_ref[...]
    xf = xs.astype(jnp.float32)
    inv_t = jnp.float32(1.0 / x_ref.shape[1])

    # Single pass over T: sum and sum-of-squares (f32 accumulation).
    s1 = jnp.sum(xf, axis=1, keepdims=True)            # (Bb,1,TC)
    s2 = jnp.sum(xf * xf, axis=1, keepdims=True)       # (Bb,1,TC)
    mean = s1 * inv_t
    # E[x^2]-mean^2 is slightly less stable than the centered two-pass form
    # when |mean| >> std; f32 accumulation + clamp keeps it safe here.
    var = jnp.maximum(s2 * inv_t - mean * mean, 0.0)    # unbiased=False
    stdev = jnp.sqrt(var) + EPS                         # sqrt(var) + eps (as in torch src)

    # Reciprocal on the per-channel vector only (O(Bb*TC), not O(T*TC)).
    inv_std = pl.reciprocal(stdev)                      # exact (approx=False)
    w = w_ref[...].astype(jnp.float32)
    b = b_ref[...].astype(jnp.float32)
    scale = w * inv_std                                 # (Bb,1,TC)
    shift = b - mean * scale                            # (Bb,1,TC)

    # Single fused scale/shift pass over the (T, TC) slab.
    if xs.dtype == jnp.bfloat16 and y_ref.dtype == jnp.bfloat16:
        # Packed bf16 FMA on v6e/v7x (half the VALU issue + vreg footprint);
        # v5e has no bf16 VALU but Mosaic upcasts internally (correct).
        y_ref[...] = xs * scale.astype(jnp.bfloat16) + shift.astype(jnp.bfloat16)
    else:
        y_ref[...] = (xf * scale + shift).astype(y_ref.dtype)
    mean_ref[...] = mean.astype(mean_ref.dtype)
    stdev_ref[...] = stdev.astype(stdev_ref.dtype)


def _revin_denorm_kernel(x_ref, mean_ref, stdev_ref, w_ref, b_ref, y_ref):
    mean = mean_ref[...].astype(jnp.float32)
    stdev = stdev_ref[...].astype(jnp.float32)
    w = w_ref[...].astype(jnp.float32)
    b = b_ref[...].astype(jnp.float32)
    inv_w = pl.reciprocal(w + EPS)                      # (1,1,TC) only
    scale = stdev * inv_w                               # (Bb,1,TC)
    shift = mean - b * scale
    xs = x_ref[...]
    if xs.dtype == jnp.bfloat16 and y_ref.dtype == jnp.bfloat16:
        y_ref[...] = xs * scale.astype(jnp.bfloat16) + shift.astype(jnp.bfloat16)
    else:
        y_ref[...] = (xs.astype(jnp.float32) * scale + shift).astype(y_ref.dtype)


# ----------------------------- hardware-aware budgets -----------------------
_BUDGET_CACHE = None


def _tpu_budgets():
    """Returns (per_step_byte_budget, vmem_limit_cap_bytes), generation-aware."""
    global _BUDGET_CACHE
    if _BUDGET_CACHE is None:
        try:
            cap = int(pltpu.get_tpu_info().vmem_capacity_bytes)
            if cap <= 0:
                cap = 64 << 20
        except Exception:
            cap = 64 << 20                      # conservative: v7x per-TC VMEM
        per_step = max(cap // 8, 4 << 20)       # ~8 MiB on v7x, ~16 MiB on v5e/v6e
        vmem_cap = (3 * cap) // 4               # <=0.75x physical: compiler headroom
        _BUDGET_CACHE = (per_step, vmem_cap)
    return _BUDGET_CACHE


# ----------------------------- tiling heuristics ----------------------------
def _round_up(v, m):
    return ((v + m - 1) // m) * m


def _choose_tiles(B, T, C, itemsize, per_step_budget):
    """Pick (batch_block, channel_tile) for the (B, T, C) layout.  C % 128 == 0."""

    def step_bytes(bb, tcc):
        # double-buffered x-in + y-out at I/O dtype, plus ~3 f32 temporaries.
        return bb * T * tcc * (4 * itemsize + 3 * 4)

    # Prefer the full channel width: contiguous per-row DMA, fewest grid steps.
    # Shrink by halving (keeping multiples of 128) only if one row won't fit.
    tc = C
    while tc > 128 and tc % 256 == 0 and step_bytes(1, tc) > per_step_budget:
        tc //= 2
    # TODO(synk): if a single (1, T, 128) block still exceeds VMEM (very long T),
    # a T-tiled two-pass (sum/sumsq) reduction with an "arbitrary" T axis is needed.

    # Pack batch rows per step when blocks are tiny (amortize ~0.35us/step).
    bb = 1
    for cand in range(B, 0, -1):
        if B % cand == 0 and step_bytes(cand, tc) <= per_step_budget:
            bb = cand
            break

    # Guarantee >= 2 grid steps so both v7x TensorCores get work (harmless on
    # single-TC v5e/v6e).
    if (B // bb) * (C // tc) < 2:
        if B > 1:
            for cand in range(B // 2, 0, -1):       # largest divisor of B <= B/2
                if B % cand == 0:
                    bb = cand
                    break
        elif tc >= 256 and tc % 256 == 0:
            tc //= 2
    return bb, tc


def _vmem_limit_bytes(bb, T, tc, itemsize, vmem_cap):
    # 2x double-buffered in/out + ~4 f32 full-slab temporaries (upcast, x*x,
    # pre-cast result) + stats + slack.
    est = bb * T * tc * (4 * itemsize + 4 * 4) + (2 << 20)
    return int(min(vmem_cap, max(32 << 20, est)))


def _io_spec(block_shape, index_map, deep_pipeline):
    """BlockSpec for the big x operand; optionally 3-deep pipelined."""
    if deep_pipeline and hasattr(pl, "Buffered"):
        try:
            return pl.BlockSpec(block_shape, index_map, pipeline_mode=pl.Buffered(3))
        except TypeError:
            pass  # pipeline_mode kwarg unavailable; fall back to default (2)
    return pl.BlockSpec(block_shape, index_map)


def _pad_channels(arrs_and_pads, C, Cp):
    """Pad last dim from C to Cp with per-array constant values."""
    out = []
    for a, cval in arrs_and_pads:
        pad_width = [(0, 0)] * (a.ndim - 1) + [(0, Cp - C)]
        out.append(jnp.pad(a, pad_width, constant_values=cval))
    return out


# ----------------------------- wrappers ------------------------------------
def revin_norm(x, weight, bias):
    """x: (B, T, C). Returns (y, mean, stdev); mean/stdev are (B, 1, C) f32."""
    B, T, C = x.shape
    Cp = _round_up(C, 128)
    if Cp != C:
        # Lane-dense padding: padded channels get weight=1, bias=0, x=0 so the
        # kernel stays full-lane; padded outputs are sliced off below.
        x, w_in, b_in = _pad_channels(
            [(x, 0.0), (weight, 1.0), (bias, 0.0)], C, Cp)
    else:
        w_in, b_in = weight, bias

    per_step_budget, vmem_cap = _tpu_budgets()
    bb, tc = _choose_tiles(B, T, Cp, x.dtype.itemsize, per_step_budget)
    grid = (Cp // tc, B // bb)                       # inner axis = batch blocks
    n_steps = grid[0] * grid[1]
    block_bytes = bb * T * tc * x.dtype.itemsize
    deep = (block_bytes < (1 << 20)) and (n_steps >= 3)   # latency-dominated case

    w3 = w_in.reshape(1, 1, Cp)
    b3 = b_in.reshape(1, 1, Cp)

    y, mean, stdev = pl.pallas_call(
        _revin_norm_kernel,
        out_shape=(
            jax.ShapeDtypeStruct((B, T, Cp), x.dtype),
            jax.ShapeDtypeStruct((B, 1, Cp), jnp.float32),
            jax.ShapeDtypeStruct((B, 1, Cp), jnp.float32),
        ),
        grid_spec=pltpu.PrefetchScalarGridSpec(
            num_scalar_prefetch=0,
            grid=grid,
            in_specs=[
                _io_spec((bb, T, tc), lambda j, i: (i, 0, j), deep),
                # w/b block index is constant across the inner (batch) axis, so
                # their re-DMA is skipped per step.
                pl.BlockSpec((1, 1, tc), lambda j, i: (0, 0, j)),
                pl.BlockSpec((1, 1, tc), lambda j, i: (0, 0, j)),
            ],
            out_specs=[
                pl.BlockSpec((bb, T, tc), lambda j, i: (i, 0, j)),
                pl.BlockSpec((bb, 1, tc), lambda j, i: (i, 0, j)),
                pl.BlockSpec((bb, 1, tc), lambda j, i: (i, 0, j)),
            ],
        ),
        compiler_params=pltpu.CompilerParams(
            dimension_semantics=("parallel", "parallel"),
            vmem_limit_bytes=_vmem_limit_bytes(bb, T, tc, x.dtype.itemsize, vmem_cap),
        ),
    )(x, w3, b3)

    if Cp != C:
        y, mean, stdev = y[:, :, :C], mean[:, :, :C], stdev[:, :, :C]
    return y, mean, stdev


def revin_denorm(x, mean, stdev, weight, bias):
    """Inverse transform. x: (B, T, C); mean/stdev: (B, 1, C)."""
    B, T, C = x.shape
    Cp = _round_up(C, 128)
    if Cp != C:
        x, mean, stdev, w_in, b_in = _pad_channels(
            [(x, 0.0), (mean, 0.0), (stdev, 1.0), (weight, 1.0), (bias, 0.0)], C, Cp)
    else:
        w_in, b_in = weight, bias

    per_step_budget, vmem_cap = _tpu_budgets()
    bb, tc = _choose_tiles(B, T, Cp, x.dtype.itemsize, per_step_budget)
    grid = (Cp // tc, B // bb)
    n_steps = grid[0] * grid[1]
    block_bytes = bb * T * tc * x.dtype.itemsize
    deep = (block_bytes < (1 << 20)) and (n_steps >= 3)

    w3 = w_in.reshape(1, 1, Cp)
    b3 = b_in.reshape(1, 1, Cp)

    y = pl.pallas_call(
        _revin_denorm_kernel,
        out_shape=jax.ShapeDtypeStruct((B, T, Cp), x.dtype),
        grid_spec=pltpu.PrefetchScalarGridSpec(
            num_scalar_prefetch=0,
            grid=grid,
            in_specs=[
                _io_spec((bb, T, tc), lambda j, i: (i, 0, j), deep),
                pl.BlockSpec((bb, 1, tc), lambda j, i: (i, 0, j)),
                pl.BlockSpec((bb, 1, tc), lambda j, i: (i, 0, j)),
                pl.BlockSpec((1, 1, tc), lambda j, i: (0, 0, j)),
                pl.BlockSpec((1, 1, tc), lambda j, i: (0, 0, j)),
            ],
            out_specs=pl.BlockSpec((bb, T, tc), lambda j, i: (i, 0, j)),
        ),
        compiler_params=pltpu.CompilerParams(
            dimension_semantics=("parallel", "parallel"),
            vmem_limit_bytes=_vmem_limit_bytes(bb, T, tc, x.dtype.itemsize, vmem_cap),
        ),
    )(x, mean, stdev, w3, b3)

    if Cp != C:
        y = y[:, :, :C]
    return y


# ----------------------------- reference (pure JAX) -------------------------
def _ref_norm(x, w, b):
    mean = jnp.mean(x, axis=1, keepdims=True)
    stdev = jnp.sqrt(jnp.var(x, axis=1, keepdims=True)) + EPS
    return (x - mean) / stdev * w + b, mean, stdev


def _ref_denorm(x, mean, stdev, w, b):
    return ((x - b) / (w + EPS)) * stdev + mean


# TODO(synk): subtract_last / skip branches of RevIN are trivial passthrough /
# slice variants; only the default (subtract_last=False, skip=False) path is
# implemented in-kernel.

def _check(B, T, C, key):
    x = jax.random.normal(key, (B, T, C), dtype=jnp.float32) * 3.0 + 1.5
    # Deterministic params, matching RevIN._init_params (affine=True).
    weight = jnp.ones((C,), dtype=jnp.float32)
    bias = jnp.zeros((C,), dtype=jnp.float32)

    # mode == 'norm'
    y, mean, stdev = revin_norm(x, weight, bias)
    jax.block_until_ready(y)
    # mode == 'denorm' (uses statistics stored from the 'norm' call)
    x_rec = revin_denorm(y, mean, stdev, weight, bias)
    jax.block_until_ready(x_rec)

    y_ref, mean_ref, stdev_ref = _ref_norm(x, weight, bias)
    x_rec_ref = _ref_denorm(y_ref, mean_ref, stdev_ref, weight, bias)
    assert jnp.allclose(mean, mean_ref, atol=1e-5, rtol=1e-5)
    assert jnp.allclose(stdev, stdev_ref, atol=1e-5, rtol=1e-5)
    assert jnp.allclose(y, y_ref, atol=1e-4, rtol=1e-5)
    assert jnp.allclose(x_rec, x_rec_ref, atol=1e-4, rtol=1e-4)


def _check_bf16(B, T, C, key):
    xf = jax.random.normal(key, (B, T, C), dtype=jnp.float32) * 3.0 + 1.5
    x = xf.astype(jnp.bfloat16)
    weight = jnp.ones((C,), dtype=jnp.float32)
    bias = jnp.zeros((C,), dtype=jnp.float32)

    y, mean, stdev = revin_norm(x, weight, bias)
    x_rec = revin_denorm(y, mean, stdev, weight, bias)
    jax.block_until_ready(x_rec)

    y_ref, mean_ref, stdev_ref = _ref_norm(x.astype(jnp.float32), weight, bias)
    assert jnp.allclose(mean, mean_ref, atol=5e-2, rtol=5e-2)
    assert jnp.allclose(stdev, stdev_ref, atol=5e-2, rtol=5e-2)
    assert jnp.allclose(y.astype(jnp.float32), y_ref, atol=2e-1, rtol=5e-2)
    assert jnp.allclose(x_rec.astype(jnp.float32), x.astype(jnp.float32),
                        atol=3e-1, rtol=5e-2)


if __name__ == "__main__":
    key = jax.random.PRNGKey(0)
    k1, k2, k3 = jax.random.split(key, 3)
    # Small shape matching the example config (num_features = C = 8):
    # exercises the pad-to-128 lane-dense path.
    _check(B=2, T=16, C=8, key=k1)
    # Full-C contiguous tile path (C multiple of 128).
    _check(B=2, T=16, C=256, key=k2)
    # bf16 I/O: packed bf16 FMA path (stats in f32).
    _check_bf16(B=4, T=32, C=128, key=k3)
    print("KERNEL_OK")
</pallas_src>

<mosaic_0001>
module attributes {stable_mosaic.version = 11 : i64} {
  func.func @_revin_norm_kernel(%arg0: i32, %arg1: i32, %arg2: memref<1x16x128xf32, #tpu.memory_space<vmem>>, %arg3: memref<1x1x128xf32, #tpu.memory_space<vmem>>, %arg4: memref<1x1x128xf32, #tpu.memory_space<vmem>>, %arg5: memref<1x16x128xf32, #tpu.memory_space<vmem>>, %arg6: memref<1x1x128xf32, #tpu.memory_space<vmem>>, %arg7: memref<1x1x128xf32, #tpu.memory_space<vmem>>) attributes {dimension_semantics = [#tpu.dimension_semantics<parallel>, #tpu.dimension_semantics<parallel>], iteration_bounds = array<i64: 1, 2>, scalar_prefetch = 0 : i64, scratch_operands = 0 : i64, tpu.core_type = #tpu.core_type<tc>, window_params = [{transform_indices = @transform_0, window_bounds = array<i64: 1, 16, 128>}, {transform_indices = @transform_1, window_bounds = array<i64: 1, 1, 128>}, {transform_indices = @transform_2, window_bounds = array<i64: 1, 1, 128>}, {transform_indices = @transform_3, window_bounds = array<i64: 1, 16, 128>}, {transform_indices = @transform_4, window_bounds = array<i64: 1, 1, 128>}, {transform_indices = @transform_5, window_bounds = array<i64: 1, 1, 128>}]} {
    %c0 = arith.constant 0 : index
    %c0_0 = arith.constant 0 : index
    %c0_1 = arith.constant 0 : index
    %0 = vector.load %arg2[%c0, %c0_0, %c0_1] : memref<1x16x128xf32, #tpu.memory_space<vmem>>, vector<1x16x128xf32>
    %cst = arith.constant dense<0.000000e+00> : vector<1x128xf32>
    %1 = vector.multi_reduction <add>, %0, %cst [1] : vector<1x16x128xf32> to vector<1x128xf32>
    %2 = vector.shape_cast %1 : vector<1x128xf32> to vector<1x1x128xf32>
    %3 = arith.mulf %0, %0 : vector<1x16x128xf32>
    %cst_2 = arith.constant dense<0.000000e+00> : vector<1x128xf32>
    %4 = vector.multi_reduction <add>, %3, %cst_2 [1] : vector<1x16x128xf32> to vector<1x128xf32>
    %5 = vector.shape_cast %4 : vector<1x128xf32> to vector<1x1x128xf32>
    %cst_3 = arith.constant 6.250000e-02 : f32
    %6 = vector.broadcast %cst_3 : f32 to vector<1x1x128xf32>
    %7 = arith.mulf %2, %6 : vector<1x1x128xf32>
    %cst_4 = arith.constant 6.250000e-02 : f32
    %8 = vector.broadcast %cst_4 : f32 to vector<1x1x128xf32>
    %9 = arith.mulf %5, %8 : vector<1x1x128xf32>
    %10 = arith.mulf %7, %7 : vector<1x1x128xf32>
    %11 = arith.subf %9, %10 : vector<1x1x128xf32>
    %cst_5 = arith.constant 0.000000e+00 : f32
    %12 = vector.broadcast %cst_5 : f32 to vector<1x1x128xf32>
    %13 = arith.maximumf %11, %12 : vector<1x1x128xf32>
    %14 = math.sqrt %13 : vector<1x1x128xf32>
    %cst_6 = arith.constant 9.99999974E-6 : f32
    %15 = vector.broadcast %cst_6 : f32 to vector<1x1x128xf32>
    %16 = arith.addf %14, %15 : vector<1x1x128xf32>
    %17 = tpu.reciprocal %16 : vector<1x1x128xf32> -> vector<1x1x128xf32>
    %c0_7 = arith.constant 0 : index
    %c0_8 = arith.constant 0 : index
    %c0_9 = arith.constant 0 : index
    %18 = vector.load %arg3[%c0_7, %c0_8, %c0_9] : memref<1x1x128xf32, #tpu.memory_space<vmem>>, vector<1x1x128xf32>
    %c0_10 = arith.constant 0 : index
    %c0_11 = arith.constant 0 : index
    %c0_12 = arith.constant 0 : index
    %19 = vector.load %arg4[%c0_10, %c0_11, %c0_12] : memref<1x1x128xf32, #tpu.memory_space<vmem>>, vector<1x1x128xf32>
    %20 = arith.mulf %18, %17 : vector<1x1x128xf32>
    %21 = arith.mulf %7, %20 : vector<1x1x128xf32>
    %22 = arith.subf %19, %21 : vector<1x1x128xf32>
    %23 = vector.broadcast %20 : vector<1x1x128xf32> to vector<1x16x128xf32>
    %24 = arith.mulf %0, %23 : vector<1x16x128xf32>
    %25 = vector.broadcast %22 : vector<1x1x128xf32> to vector<1x16x128xf32>
    %26 = arith.addf %24, %25 : vector<1x16x128xf32>
    %c0_13 = arith.constant 0 : index
    %c0_14 = arith.constant 0 : index
    %c0_15 = arith.constant 0 : index
    %27 = vector.load %arg5[%c0_13, %c0_14, %c0_15] : memref<1x16x128xf32, #tpu.memory_space<vmem>>, vector<1x16x128xf32>
    tpu.vector_store %arg5[%c0_13, %c0_14, %c0_15], %26 {strides = array<i32>} : memref<1x16x128xf32, #tpu.memory_space<vmem>>, vector<1x16x128xf32>,
    %c0_16 = arith.constant 0 : index
    %c0_17 = arith.constant 0 : index
    %c0_18 = arith.constant 0 : index
    %28 = vector.load %arg6[%c0_16, %c0_17, %c0_18] : memref<1x1x128xf32, #tpu.memory_space<vmem>>, vector<1x1x128xf32>
    tpu.vector_store %arg6[%c0_16, %c0_17, %c0_18], %7 {strides = array<i32>} : memref<1x1x128xf32, #tpu.memory_space<vmem>>, vector<1x1x128xf32>,
    %c0_19 = arith.constant 0 : index
    %c0_20 = arith.constant 0 : index
    %c0_21 = arith.constant 0 : index
    %29 = vector.load %arg7[%c0_19, %c0_20, %c0_21] : memref<1x1x128xf32, #tpu.memory_space<vmem>>, vector<1x1x128xf32>
    tpu.vector_store %arg7[%c0_19, %c0_20, %c0_21], %16 {strides = array<i32>} : memref<1x1x128xf32, #tpu.memory_space<vmem>>, vector<1x1x128xf32>,
    return
  }
  func.func @transform_0(%arg0: i32, %arg1: i32) -> (i32, i32, i32) {
    %c0_i32 = arith.constant 0 : i32
    %c0_i32_0 = arith.constant 0 : i32
    return %arg1, %c0_i32, %arg0 : i32, i32, i32
  }
  func.func @transform_1(%arg0: i32, %arg1: i32) -> (i32, i32, i32) {
    %c0_i32 = arith.constant 0 : i32
    %c0_i32_0 = arith.constant 0 : i32
    %c0_i32_1 = arith.constant 0 : i32
    return %c0_i32, %c0_i32_0, %arg0 : i32, i32, i32
  }
  func.func @transform_2(%arg0: i32, %arg1: i32) -> (i32, i32, i32) {
    %c0_i32 = arith.constant 0 : i32
    %c0_i32_0 = arith.constant 0 : i32
    %c0_i32_1 = arith.constant 0 : i32
    return %c0_i32, %c0_i32_0, %arg0 : i32, i32, i32
  }
  func.func @transform_3(%arg0: i32, %arg1: i32) -> (i32, i32, i32) {
    %c0_i32 = arith.constant 0 : i32
    %c0_i32_0 = arith.constant 0 : i32
    return %arg1, %c0_i32, %arg0 : i32, i32, i32
  }
  func.func @transform_4(%arg0: i32, %arg1: i32) -> (i32, i32, i32) {
    %c0_i32 = arith.constant 0 : i32
    %c0_i32_0 = arith.constant 0 : i32
    return %arg1, %c0_i32, %arg0 : i32, i32, i32
  }
  func.func @transform_5(%arg0: i32, %arg1: i32) -> (i32, i32, i32) {
    %c0_i32 = arith.constant 0 : i32
    %c0_i32_0 = arith.constant 0 : i32
    return %arg1, %c0_i32, %arg0 : i32, i32, i32
  }
}

</mosaic_0001>

<bundles_post_ra>
// kernel: tpu_custom_call.1
= control target key start
LH: loop header
LB: loop body
LE: loop exit
PB: predicated region body
PF: predicated region fallthrough
CT: control target
= control target key end

     0   :  { %11 = vsyncpa [#allocation3], 0  ;;  %s1121_s0 = inlined_call_operand.hbm [shape: f32[2,16,128], index: 0, kind: input, shape index: {}]   ;;  %s1122_s1 = inlined_call_operand.vmem [shape: f32[1,1,128], index: 1, kind: input, shape index: {}]   ;;  %s1123_s2 = inlined_call_operand.vmem [shape: f32[1,1,128], index: 2, kind: input, shape index: {}]   ;;  %s1124_s3 = inlined_call_operand.hbm [shape: f32[2,16,128], index: 3, kind: output, shape index: {0}]   ;;  %s1125_s4 = inlined_call_operand.hbm [shape: f32[2,1,128], index: 4, kind: output, shape index: {1}]   ;;  %s1126_s5 = inlined_call_operand.hbm [shape: f32[2,1,128], index: 5, kind: output, shape index: {2}]  }
   0x1   :  { %13 = vsyncpa [#allocation3 + $0x1], 0 }
   0x2   :  { %14 = vsyncpa [#allocation4], 0 }
   0x3   :  { %16 = vsyncpa [#allocation4 + $0x1], 0 }
   0x4   :  { %17 = vsyncpa [#allocation7], 0 }
   0x5   :  { %19 = vsyncpa [#allocation7 + $0x1], 0  ;;  %s885_s18 = smov 0   ;;  %s887_s19 = smov 0  }
   0x6   :  { %s889_s20 = smov 0   ;;  %s891_s21 = smov 0  }
   0x7   :  { %s893_s22 = smov 0   ;;  %s895_s23 = smov 0  }
   0x8 LB: > { %s916_s24 = sadd.s32 4294967295, %s845_s23   ;;  %s1127_s25 = sadd.s32 4294967294, %s845_s23   ;;  %s845_s23 = sphi %s895_s23, %s25_s23   ;;  %s841_s22 = sphi %s893_s22, %s1139_s22   ;;  %s837_s21 = sphi %s891_s21, %s1138_s21   ;;  %s833_s20 = sphi %s889_s20, %s1137_s20   ;;  %s829_s19 = sphi %s887_s19, %s1136_s19   ;;  %s825_s18 = sphi %s885_s18, %s1135_s18  }
   0x9   : > { %s34_s26 = sadd.s32 1, %s841_s22  ;;  %s46_s27 = sadd.s32 1, %s833_s20 }
   0xa   : > { %p35_p0 = scmp.ge.s32.totalorder %s34_s26, 2  ;;  %p53_p1 = scmp.ne.s32.totalorder %s833_s20, %s829_s19 }
   0xb   : > { %p54_p2 = scmp.eq.s32.totalorder %s845_s23, 0  ;;  %p59_p3 = scmp.ne.s32.totalorder %s829_s19, %s825_s18 }
   0xc   : > { %s1141_s26 = smov (%p35_p0, %s34_s26), 0  ;;  %p60_p5 = scmp.eq.s32.totalorder %s916_s24, 0 }
   0xd   : > { %p928_p4 = por %p54_p2, %p53_p1  ;;  %s41_s29 = ssub.s32 %s841_s22, %s1141_s26 }
   0xe   : > { %p137_p6 = scmp.eq.s32.totalorder %s916_s24, 1  ;;  %p44_p7 = scmp.eq.s32.totalorder %s41_s29, 0 }
   0xf   : > { %p936_p8 = por %p60_p5, %p59_p3  ;;  %p143_p10 = scmp.eq.s32.totalorder %s1127_s25, 1 }
  0x10   : > { %p940_p9 = por %p137_p6, %p53_p1  ;;  %p623_p13 = scmp.lt.s32.totalorder %s845_s23, 2 }
  0x11   : > { %s947_s7 = scalar_select %p44_p7, %s833_s20, %s46_s27  }
  0x12   : > { %p949_p11 = por %p143_p10, %p59_p3  ;;  %s231_s9 = sand.u32 1, %s833_s20  }
  0x13   : > { %s586_s10 = sshll.u32 %s231_s9, 4  ;;  %s599_s11 = sshll.u32 %s841_s22, 8 }
  0x14   : > { %s242_s14 = scalar_lea.hbm %s1121_s0, %s599_s11  ;;  %s235_s15 = scalar_lea.vmem [#allocation2], %s586_s10 }
  0x15   : > { %s243_s16 = sshll.u32 %s235_s15, 4  ;;  %p962_p0 = pnand %p623_p13, %p928_p4  ;;  %s244_s16 = int_to_ptr.vmem [resolvable:$true] %s243_s16 }
  0x16   : > { %p589_p1 = scmp.ge.s32.totalorder %s845_s23, 1  ;;  %s232_s27 = scalar_lea.sflag [#allocation3], %s231_s9 }
  0x17   : > { %p683_p2 = pneg %p962_p0  ;;  %s694_s29 = scalar_lea.vmem %s244_s16, 256 }
  0x18   : > { %p695_p3 = scmp.ne.s32.totalorder %s244_s16, %s694_s29  ;;  %s847_s25 = smov [#allocation2]  }
  0x19   : > { %s699_s12 = sshll.u32 %s847_s25, 4  ;;  %s700_s12 = int_to_ptr.vmem [resolvable:$false] %s699_s12 }
  0x1a   : > { %p697_p5 = pnand %p695_p3, %p683_p2  ;;  %s701_s10 = scalar_lea.vmem %s700_s12, 512 }
  0x1b   : > { %p702_p7 = scmp.lt.s32.totalorder %s244_s16, %s700_s12  ;;  %p703_p10 = scmp.lt.s32.totalorder %s701_s10, %s694_s29 }
  0x1c   : > { %p698_p6 = pneg %p697_p5 }
  0x1d   : > { %p704_p12 = por %p703_p10, %p702_p7 }
  0x1f   : > { %p705_p4 = pnand %p704_p12, %p698_p6 }
  0x21   : > { %708 = shalt.err (!%p705_p4)
}
  0x22   : > { %s848_s28 = smov 128   ;;  %s849_s9 = smov 8  }
  0x23   : > { %612 = dma.hbm_to_vmem [thread:$0]  (!%p962_p0), %s242_s14, 256, %s244_s16, %s232_s27, %s848_s28, %s848_s28, %s849_s9  }
  0x24   : > { %p251_p13 = scmp.lt.s32.totalorder %s845_s23, 3 }
  0x26   : > { %p252_p2 = pnand %p589_p1, %p251_p13 }
  0x27   : > { %s975_s25 = sand.u32 (!%p252_p2), 1, %s829_s19  }
  0x28   : > { %255 = sbr.rel (%p252_p2) target bundleno = 137 (0x89), region = 32  ;;  %s590_s11 = sshll.u32 (!%p252_p2), %s975_s25, 4 }
  0x29   : > { %s258_s13 = scalar_lea.sflag (!%p252_p2), [#allocation3], %s975_s25  ;;  %s261_s15 = scalar_lea.vmem (!%p252_p2), [#allocation2], %s590_s11 }
  0x2d   : > { %812 = dma.done.wait (%p936_p8), %s258_s13, 256  }
  0x2e   : > { %814 = vsyncadd (%p936_p8), %s258_s13, 4294967040  ;;  %v985_v0 = vld [vmem:[%s261_s15] sm:$0xff]  ;;  %v987_v1 = vld [vmem:[%s261_s15 + $0x8] sm:$0xff]  ;;  %s295_s30 = scalar_lea.vmem [#allocation6], %s975_s25  ;;  %s370_s16 = sand.u32 1, %s916_s24  }
  0x2f   : > { %v310_v2 = vadd.f32 %v987_v1, %v985_v0  ;;  %v317_v3 = vmul.f32 %v985_v0, %v985_v0  ;;  %v318_v4 = vmul.f32 %v987_v1, %v987_v1  ;;  %s405_s14 = sshll.u32 %s295_s30, 4  ;;  %s595_s17 = sshll.u32 %s837_s21, 4  ;;  %s998_s14 = int_to_ptr.vmem [resolvable:$true] %s405_s14 }
  0x30   : > { %s1007_s12 = scalar_lea.hbm %s1125_s4, %s595_s17  ;;  %s1012_s24 = scalar_lea.sflag [#allocation7], %s370_s16 }
  0x31   : > { %v311_v5 = vrot.slane %v310_v2, 4  ;;  %v319_v6 = vadd.f32 %v318_v4, %v317_v3  ;;  %s709_s10 = scalar_lea.vmem %s998_s14, 16  ;;  %s850_s28 = smov [#allocation6]  }
  0x32   : > { %p710_p8 = scmp.ne.s32.totalorder %s998_s14, %s709_s10  ;;  %s713_s9 = sshll.u32 %s850_s28, 4  ;;  %s714_s9 = int_to_ptr.vmem [resolvable:$false] %s713_s9 }
  0x33   : > { %v312_v7 = vadd.f32 %v311_v5, %v310_v2  ;;  %v320_v8 = vrot.slane %v319_v6, 4  ;;  %s715_s13 = scalar_lea.vmem %s714_s9, 32  ;;  %p716_p1 = scmp.lt.s32.totalorder %s998_s14, %s714_s9 }
  0x34   : > { %p711_p12 = pnand %p710_p8, %p940_p9  ;;  %p717_p3 = scmp.lt.s32.totalorder %s715_s13, %s709_s10 }
  0x35   : > { %v313_v9 = vrot.slane %v312_v7, 2  ;;  %v321_v10 = vadd.f32 %v320_v8, %v319_v6 }
  0x36   : > { %p712_p0 = pneg %p711_p12  ;;  %p718_p5 = por %p717_p3, %p716_p1 }
  0x37   : > { %v314_v11 = vadd.f32 %v313_v9, %v312_v7  ;;  %v322_v12 = vrot.slane %v321_v10, 2 }
  0x38   : > { %p719_p6 = pnand %p718_p5, %p712_p0 }
  0x39   : > { %v315_v13 = vrot.slane %v314_v11, 1  ;;  %v323_v14 = vadd.f32 %v322_v12, %v321_v10 }
  0x3b   : > { %v316_v15 = vadd.f32 %v315_v13, %v314_v11  ;;  %v324_v16 = vrot.slane %v323_v14, 1 }
  0x3d   : > { %v325_v17 = vadd.f32 %v324_v16, %v323_v14  ;;  %v1000_v18 = vmul.f32 0.0625, %v316_v15 }
  0x3f   : > { %v327_v19 = vmul.f32 0.0625, %v325_v17  ;;  %v328_v20 = vmul.f32 %v1000_v18, %v1000_v18  ;;  %363 = vst [vmem:[%s295_s30] sm:$0x1] %v1000_v18 }
  0x40   : > { %722 = shalt.err (!%p719_p6)
}
  0x41   : > { %s723_s15 = scalar_lea.hbm %s1007_s12, 16  ;;  %s727_s27 = scalar_lea.hbm %s1125_s4, 32 }
  0x42   : > { %p724_p7 = scmp.ne.s32.totalorder %s1007_s12, %s723_s15  ;;  %p728_p13 = scmp.lt.s32.totalorder %s1007_s12, %s1125_s4 }
  0x43   : > { %p729_p2 = scmp.lt.s32.totalorder %s727_s27, %s723_s15 }
  0x44   : > { %p725_p10 = pnand %p724_p7, %p940_p9 }
  0x45   : > { %p730_p8 = por %p729_p2, %p728_p13 }
  0x46   : > { %p726_p4 = pneg %p725_p10 }
  0x48   : > { %p731_p12 = pnand %p730_p8, %p726_p4 }
  0x4a   : > { %734 = shalt.err (!%p731_p12)
}
  0x4b   : > { %604 = dma.vmem_to_hbm [thread:$0]  (%p940_p9), %s998_s14, 16, %s1007_s12, %s1012_s24   ;;  %v329_v21 = vsub.f32 %v327_v19, %v328_v20 }
  0x4c   : > { %s301_s10 = scalar_lea.vmem [#allocation8], %s975_s25  ;;  %s417_s14 = scalar_lea.hbm %s1126_s5, %s595_s17 }
  0x4d   : > { %v330_v22 = vmax.f32 %v329_v21, 0.0  ;;  %s419_s9 = sshll.u32 %s301_s10, 4  ;;  %s851_s30 = smov [#allocation8]   ;;  %s420_s9 = int_to_ptr.vmem [resolvable:$true] %s419_s9 }
  0x4e   : > { %s735_s12 = scalar_lea.vmem %s420_s9, 16  ;;  %s739_s16 = sshll.u32 %s851_s30, 4  ;;  %s740_s16 = int_to_ptr.vmem [resolvable:$false] %s739_s16 }
  0x4f   : > { %677 = vrsqrt.f32 %v330_v22  ;;  %vm333_vm0 = vcmp.eq.f32.partialorder %v330_v22, inf  ;;  %v336_v24 = vand.u32 2147483648, %v330_v22  ;;  %vm335_vm1 = vcmp.eq.f32.partialorder %v330_v22, 0.0  ;;  %p736_p0 = scmp.ne.s32.totalorder %s420_s9, %s735_s12  ;;  %s741_s27 = scalar_lea.vmem %s740_s16, 32 }
  0x50   : > { %p742_p5 = scmp.lt.s32.totalorder %s420_s9, %s740_s16  ;;  %p743_p6 = scmp.lt.s32.totalorder %s741_s27, %s735_s12 }
  0x51   : > { %p737_p1 = pnand %p736_p0, %p940_p9 }
  0x52   : > { %p744_p7 = por %p743_p6, %p742_p5 }
  0x53   : > { %p738_p3 = pneg %p737_p1 }
  0x55   : > { %p745_p10 = pnand %p744_p7, %p738_p3 }
  0x5c   : > { %v678_v23 = vpop.eup %677 }
  0x5d   : > { %v332_v25 = vmul.f32 %v678_v23, %v330_v22 }
  0x5f   : > { %v334_v26 = vsel %vm333_vm0, %v330_v22, %v332_v25 }
  0x60   : > { %v337_v27 = vsel %vm335_vm1, %v336_v24, %v334_v26 }
  0x61   : > { %v338_v28 = vadd.f32 1e-05, %v337_v27 }
  0x63   : > { %679 = vrcp.f32 %v338_v28  ;;  %364 = vst [vmem:[%s301_s10] sm:$0x1] %v338_v28 }
  0x64   : > { %748 = shalt.err (!%p745_p10)
}
  0x65   : > { %s749_s29 = scalar_lea.hbm %s417_s14, 16  ;;  %s753_s10 = scalar_lea.hbm %s1126_s5, 32 }
  0x66   : > { %p750_p4 = scmp.ne.s32.totalorder %s417_s14, %s749_s29  ;;  %p754_p8 = scmp.lt.s32.totalorder %s417_s14, %s1126_s5 }
  0x67   : > { %p755_p12 = scmp.lt.s32.totalorder %s753_s10, %s749_s29 }
  0x68   : > { %p751_p13 = pnand %p750_p4, %p940_p9 }
  0x69   : > { %p756_p0 = por %p755_p12, %p754_p8 }
  0x6a   : > { %p752_p2 = pneg %p751_p13 }
  0x6c   : > { %p757_p1 = pnand %p756_p0, %p752_p2 }
  0x6e   : > { %760 = shalt.err (!%p757_p1)
}
  0x6f   : > { %605 = dma.vmem_to_hbm [thread:$0]  (%p940_p9), %s420_s9, 16, %s417_s14, %s1012_s24   ;;  %v346_v29 = vlaneseq  ;;  %v340_v31 = vld [vmem:[%s1122_s1] sm:$0x1] }
  0x70   : > { %v680_v33 = vpop.eup %679  ;;  %v341_v35 = vld [vmem:[%s1123_s2] sm:$0x1]  ;;  %s289_s29 = scalar_lea.vmem [#allocation5], %s590_s11  ;;  %s600_s9 = sshll.u32 %s837_s21, 8 }
  0x71   : > { %v347_v30 = vshrl.u32 %v346_v29, 7  ;;  %v342_v34 = vmul.f32 %v680_v33, %v340_v31  ;;  %s388_s24 = sshll.u32 %s289_s29, 4  ;;  %s1071_s28 = scalar_lea.hbm %s1124_s3, %s600_s9  ;;  %s1066_s24 = int_to_ptr.vmem [resolvable:$true] %s388_s24 }
  0x72   : > { %s366_s11 = scalar_lea.sflag [#allocation4], %s975_s25  ;;  %s761_s10 = scalar_lea.vmem %s1066_s24, 256 }
  0x73   : > { %v348_v32 = vsub.s32 0, %v347_v30  ;;  %v343_v36 = vmul.f32 %v342_v34, %v1000_v18  ;;  %p762_p3 = scmp.ne.s32.totalorder %s1066_s24, %s761_s10  ;;  %s852_s21 = smov [#allocation5]  }
  0x74   : > { %s765_s13 = sshll.u32 %s852_s21, 4  ;;  %s766_s13 = int_to_ptr.vmem [resolvable:$false] %s765_s13 }
  0x75   : > { %v349_v37 = vrot.slane %v342_v34, %v348_v32  ;;  %v344_v38 = vsub.f32 %v341_v35, %v343_v36  ;;  %p763_p5 = pnand %p762_p3, %p940_p9  ;;  %s767_s15 = scalar_lea.vmem %s766_s13, 512 }
  0x76   : > { %p768_p7 = scmp.lt.s32.totalorder %s1066_s24, %s766_s13  ;;  %p769_p10 = scmp.lt.s32.totalorder %s767_s15, %s761_s10 }
  0x77   : > { %v351_v39 = vmul.f32 %v349_v37, %v985_v0  ;;  %v352_v40 = vmul.f32 %v349_v37, %v987_v1  ;;  %v357_v41 = vrot.slane %v344_v38, %v348_v32  ;;  %p764_p6 = pneg %p763_p5 }
  0x78   : > { %p770_p4 = por %p769_p10, %p768_p7 }
  0x79   : > { %v359_v42 = vadd.f32 %v357_v41, %v351_v39  ;;  %v360_v43 = vadd.f32 %v357_v41, %v352_v40 }
  0x7a   : > { %p771_p13 = pnand %p770_p4, %p764_p6 }
  0x7b   : > { %361 = vst [vmem:[%s289_s29] sm:$0xff] %v359_v42  ;;  %362 = vst [vmem:[%s289_s29 + $0x8] sm:$0xff] %v360_v43 }
  0x7c   : > { %774 = shalt.err (!%p771_p13)
}
  0x7d   : > { %s775_s12 = scalar_lea.hbm %s1071_s28, 256  ;;  %s779_s27 = scalar_lea.hbm %s1124_s3, 512 }
  0x7e   : > { %p776_p2 = scmp.ne.s32.totalorder %s1071_s28, %s775_s12  ;;  %p780_p0 = scmp.lt.s32.totalorder %s1071_s28, %s1124_s3 }
  0x7f   : > { %p781_p1 = scmp.lt.s32.totalorder %s779_s27, %s775_s12 }
  0x80   : > { %p777_p8 = pnand %p776_p2, %p940_p9 }
  0x81   : > { %p782_p3 = por %p781_p1, %p780_p0 }
  0x82   : > { %p778_p12 = pneg %p777_p8 }
  0x84   : > { %p783_p5 = pnand %p782_p3, %p778_p12 }
  0x86   : > { %786 = shalt.err (!%p783_p5)
}
  0x87   : > { %s853_s14 = smov 128   ;;  %s854_s17 = smov 8  }
  0x88   : > { %603 = dma.vmem_to_hbm [thread:$0]  (%p940_p9), %s1066_s24, 256, %s1071_s28, %s366_s11, %s853_s14, %s853_s14, %s854_s17  }
  0x89 PF: > { %s431_s10 = sand.u32 1, %s825_s18   ;;  %p1133_p6 = scmp.ge.s32.totalorder %s845_s23, 2 }
  0x8a   : > { %s432_s21 = scalar_lea.sflag [#allocation4], %s431_s10 }
  0x8b   : > { %p614_p7 = pnand %p1133_p6, %p949_p11 }
  0x8d   : > { %p615_p10 = pneg %p614_p7 }
  0x8f   : > { %816 = dma.done.wait (%p615_p10), %s432_s21, 256  }
  0x90   : > { %818 = vsyncadd (%p615_p10), %s432_s21, 4294967040  ;;  %s1134_s13 = sadd.s32 4294967294, %s845_s23  }
  0x91   : > { %s440_s15 = sand.u32 1, %s1134_s13  }
  0x92   : > { %s441_s12 = scalar_lea.sflag [#allocation7], %s440_s15 }
  0x93   : > { %820 = dma.done.wait (%p615_p10), %s441_s12, 32  }
  0x94   : > { %822 = vsyncadd (%p615_p10), %s441_s12, 4294967264  ;;  %s25_s23 = sadd.s32 1, %s845_s23   ;;  %s1135_s18 = smov %s829_s19 }
  0x95   : > { %p22_p9 = scmp.ge.s32.totalorder %s25_s23, 4   ;;  %s1136_s19 = smov %s833_s20 }
  0x96   : > { %s1137_s20 = smov %s947_s7  ;;  %s1138_s21 = smov %s841_s22 }
  0x97   : > { %s1139_s22 = smov %s1141_s26  ;;  %24 = sbr.rel (!%p22_p9) target bundleno = 8 (0x8), region = 115 }
  0x9c   :  { %453 = vsyncpa [#allocation3], 1 }
  0x9d   :  { %455 = vsyncpa [#allocation3 + $0x1], 1 }
  0x9e   :  { %456 = vsyncpa [#allocation4], 1 }
  0x9f   :  { %458 = vsyncpa [#allocation4 + $0x1], 1 }
  0xa0   :  { %459 = vsyncpa [#allocation7], 1 }
  0xa1   :  { %461 = vsyncpa [#allocation7 + $0x1], 1 }

</bundles_post_ra>
